<compile_context>
chip_gen: v6e
topology: v6e:2x2x1
jax: 0.10.0
libtpu: 0.0.40
codegen_flags: <defaults>
</compile_context>

<pallas_src>
import jax
import jax.numpy as jnp
from jax.experimental import pallas as pl
from jax.experimental.pallas import tpu as pltpu


def sdpa_kernel(q_ref, k_ref, inv_ref, v_ref, o_ref):
    # qk = query @ key.transpose(-2, -1) -> scalar.
    # Lane-dense elementwise multiply + reduce; no MXU for a 1x1 result.
    qk = jnp.sum(q_ref[...] * k_ref[...])

    # scaled_qk = qk / inv_scale_factor on the lane-dense (1, Dq) row.
    # Approx EUP reciprocal: only the finiteness of s matters below.
    s = qk * pl.reciprocal(inv_ref[...], approx=True)        # (1, Dq)

    # softmax over a size-1 axis == 1.0 for finite inputs. (s - s) is 0.0 when s
    # is finite and NaN when s is ±inf/NaN, matching exp(s - max(s)) / sum on a
    # single element, so NaN propagation from q/k/inv_scale is preserved.
    nan_guard = s - s                                         # (1, Dq): 0.0 or NaN

    # TODO(synk): F.dropout with p=dropout_p (=1) in PyTorch training mode would
    # zero the output; kernel implements deterministic inference (identity).
    # TODO(synk): if many (q, k, v, inv) instances ever arrive together, add a
    # leading "parallel" grid axis to amortize dispatch (and use both v7x TCs).

    # output = softmax_qk @ value with K == 1 is the value row broadcast to every
    # query row:  (1 + g) * v == v + g  for g in {0, NaN}.  One XLU transpose
    # moves the 128 guards lane -> sublane; the broadcast add runs on the VPU.
    guard_col = jnp.transpose(nan_guard)                      # (Dq, 1)
    o_ref[...] = (v_ref[...] + guard_col).astype(o_ref.dtype)  # (Dq, Dv)


def model_forward(query, key, value, inv_scale_factor):
    """query: (1, Dq), key: (1, Dk), value: (1, Dv), inv_scale_factor: (1, Dq, 1)."""
    Dq = query.shape[-1]
    Dk = key.shape[-1]
    Dv = value.shape[-1]
    assert Dq == Dk, "query @ key.T requires query_dim == key_dim"
    assert inv_scale_factor.size == Dq

    # Lane-dense row: one contiguous 512 B HBM->VMEM transfer instead of a
    # sublane-strided (Dq, 1) column padded to a full (8,128) tile.
    inv_row = inv_scale_factor.reshape(1, Dq)

    out_dtype = value.dtype

    cost = pl.CostEstimate(
        flops=Dq * Dv + 4 * Dq,                 # broadcast add + qk reduce + guard
        transcendentals=Dq,                     # approx reciprocal on the EUP
        bytes_accessed=4 * (Dq * Dv + Dv + 3 * Dq),
    )

    out2d = pl.pallas_call(
        sdpa_kernel,
        out_shape=jax.ShapeDtypeStruct((Dq, Dv), out_dtype),
        in_specs=[
            pl.BlockSpec(memory_space=pltpu.MemorySpace.VMEM),  # query (1, Dq)
            pl.BlockSpec(memory_space=pltpu.MemorySpace.VMEM),  # key   (1, Dk)
            pl.BlockSpec(memory_space=pltpu.MemorySpace.VMEM),  # inv   (1, Dq)
            pl.BlockSpec(memory_space=pltpu.MemorySpace.VMEM),  # value (1, Dv)
        ],
        out_specs=pl.BlockSpec(memory_space=pltpu.MemorySpace.VMEM),
        cost_estimate=cost,
    )(query, key, inv_row, value)

    return out2d.reshape(1, Dq, Dv)


if __name__ == "__main__":
    # Module-default dims: query_dim = key_dim = 128, value_dim = 512.
    QUERY_DIM = 128
    KEY_DIM = 128
    VALUE_DIM = 512

    root = jax.random.PRNGKey(0)
    kq, kk, kv, ks, kx1, kx2 = jax.random.split(root, 6)

    # Deterministic "parameters" (module __init__ shapes).
    query = jax.random.normal(kq, (1, QUERY_DIM), dtype=jnp.float32)
    key = jax.random.normal(kk, (1, KEY_DIM), dtype=jnp.float32)
    value = jax.random.normal(kv, (1, VALUE_DIM), dtype=jnp.float32)

    # Forward inputs. x1, x2 are unused by the reference forward but constructed
    # to mirror the module signature.
    inv_scale_factor = jax.random.normal(ks, (1, QUERY_DIM, 1), dtype=jnp.float32)
    x1 = jax.random.normal(kx1, (2, QUERY_DIM), dtype=jnp.float32)  # unused
    x2 = jax.random.normal(kx2, (2, KEY_DIM), dtype=jnp.float32)    # unused

    out = model_forward(query, key, value, inv_scale_factor)
    out = jax.block_until_ready(out)

    # Reference check in plain JAX (dropout as inference identity).
    qk_ref = query @ key.T                                      # (1, 1)
    scaled_ref = qk_ref / inv_scale_factor                      # (1, Dq, 1)
    e = jnp.exp(scaled_ref - scaled_ref.max(axis=-1, keepdims=True))
    soft_ref = e / e.sum(axis=-1, keepdims=True)                # (1, Dq, 1)
    out_ref = soft_ref @ value[None, :, :]                      # (1, Dq, Dv)

    assert out.shape == (1, QUERY_DIM, VALUE_DIM)
    assert out.dtype == value.dtype
    assert jnp.allclose(out, out_ref, atol=1e-5, rtol=1e-5)

    print("KERNEL_OK")
</pallas_src>

<mosaic_0001>
module attributes {stable_mosaic.version = 11 : i64} {
  func.func @sdpa_kernel(%arg0: memref<1x128xf32, #tpu.memory_space<vmem>>, %arg1: memref<1x128xf32, #tpu.memory_space<vmem>>, %arg2: memref<1x128xf32, #tpu.memory_space<vmem>>, %arg3: memref<1x512xf32, #tpu.memory_space<vmem>>, %arg4: memref<128x512xf32, #tpu.memory_space<vmem>>) attributes {dimension_semantics = [], scalar_prefetch = 0 : i64, scratch_operands = 0 : i64, tpu.core_type = #tpu.core_type<tc>} {
    %c0 = arith.constant 0 : index
    %c0_0 = arith.constant 0 : index
    %0 = vector.load %arg0[%c0, %c0_0] : memref<1x128xf32, #tpu.memory_space<vmem>>, vector<1x128xf32>
    %c0_1 = arith.constant 0 : index
    %c0_2 = arith.constant 0 : index
    %1 = vector.load %arg1[%c0_1, %c0_2] : memref<1x128xf32, #tpu.memory_space<vmem>>, vector<1x128xf32>
    %2 = arith.mulf %0, %1 : vector<1x128xf32>
    %3 = vector.shape_cast %2 : vector<1x128xf32> to vector<1x1x128xf32>
    %cst = arith.constant dense<0.000000e+00> : vector<1xf32>
    %4 = vector.multi_reduction <add>, %3, %cst [1, 2] : vector<1x1x128xf32> to vector<1xf32>
    %5 = vector.shape_cast %4 : vector<1xf32> to vector<1x1x1xf32>
    %6 = vector.extract %5[0, 0, 0] : f32 from vector<1x1x1xf32>
    %c0_3 = arith.constant 0 : index
    %c0_4 = arith.constant 0 : index
    %7 = vector.load %arg2[%c0_3, %c0_4] : memref<1x128xf32, #tpu.memory_space<vmem>>, vector<1x128xf32>
    %8 = tpu.reciprocal %7 {approx = true} : vector<1x128xf32> -> vector<1x128xf32>
    %9 = vector.broadcast %6 : f32 to vector<1x128xf32>
    %10 = arith.mulf %9, %8 : vector<1x128xf32>
    %11 = arith.subf %10, %10 : vector<1x128xf32>
    %12 = tpu.transpose %11, [1, 0] : vector<1x128xf32> -> vector<128x1xf32>
    %c0_5 = arith.constant 0 : index
    %c0_6 = arith.constant 0 : index
    %13 = vector.load %arg3[%c0_5, %c0_6] : memref<1x512xf32, #tpu.memory_space<vmem>>, vector<1x512xf32>
    %14 = vector.broadcast %13 : vector<1x512xf32> to vector<128x512xf32>
    %15 = vector.broadcast %12 : vector<128x1xf32> to vector<128x512xf32>
    %16 = arith.addf %14, %15 : vector<128x512xf32>
    %c0_7 = arith.constant 0 : index
    %c0_8 = arith.constant 0 : index
    %17 = vector.load %arg4[%c0_7, %c0_8] : memref<128x512xf32, #tpu.memory_space<vmem>>, vector<128x512xf32>
    tpu.vector_store %arg4[%c0_7, %c0_8], %16 {strides = array<i32>} : memref<128x512xf32, #tpu.memory_space<vmem>>, vector<128x512xf32>,
    return
  }
}

</mosaic_0001>

<bundles_post_ra>
// kernel: tpu_custom_call.1
= control target key start
LH: loop header
LB: loop body
LE: loop exit
PB: predicated region body
PF: predicated region fallthrough
CT: control target
= control target key end

     0   :  { %9 = vsyncpa [#allocation3], 0  ;;  %s538_s0 = inlined_call_operand.hbm [shape: f32[1,128], index: 0, kind: input, shape index: {}]   ;;  %s539_s1 = inlined_call_operand.vmem [shape: f32[1,128], index: 1, kind: input, shape index: {}]   ;;  %s540_s2 = inlined_call_operand.hbm [shape: f32[1,128], index: 2, kind: input, shape index: {}]   ;;  %s541_s3 = inlined_call_operand.vmem [shape: f32[1,512], index: 3, kind: input, shape index: {}]   ;;  %s542_s4 = inlined_call_operand.hbm [shape: f32[128,512], index: 4, kind: output, shape index: {}]  }
   0x1   :  { %10 = vsyncpa [#allocation6], 0 }
   0x2   :  { %11 = vsyncpa [#allocation4], 0  ;;  %s420_s15 = smov [#allocation2]   ;;  %s421_s17 = smov [#allocation5]  }
   0x3   :  { %s18_s16 = sshll.u32 %s420_s15, 4  ;;  %s30_s18 = sshll.u32 %s421_s17, 4  ;;  %s19_s16 = int_to_ptr.vmem [resolvable:$true] %s18_s16  ;;  %s31_s18 = int_to_ptr.vmem [resolvable:$true] %s30_s18 }
   0x4   :  { %s362_s19 = scalar_lea.vmem %s19_s16, 16  ;;  %s366_s20 = scalar_lea.vmem %s19_s16, 32 }
   0x5   :  { %p363_p0 = scmp.ne.s32.totalorder %s19_s16, %s362_s19  ;;  %p367_p1 = scmp.lt.s32.totalorder %s19_s16, %s19_s16 }
   0x6   :  { %p368_p2 = scmp.lt.s32.totalorder %s366_s20, %s362_s19 }
   0x8   :  { %p369_p3 = por %p368_p2, %p367_p1 }
   0xa   :  { %p370_p4 = pnand %p369_p3, %p363_p0 }
   0xc   :  { %373 = shalt.err (!%p370_p4)
}
   0xd   :  { %21 = dma.hbm_to_vmem [thread:$0]  %s538_s0, 16, %s19_s16, [#allocation3]  }
   0xe   :  { %s382_s23 = scalar_lea.vmem %s31_s18, 16  ;;  %s386_s24 = scalar_lea.vmem %s31_s18, 32 }
   0xf   :  { %p383_p5 = scmp.ne.s32.totalorder %s31_s18, %s382_s23  ;;  %p387_p6 = scmp.lt.s32.totalorder %s31_s18, %s31_s18 }
  0x10   :  { %p388_p7 = scmp.lt.s32.totalorder %s386_s24, %s382_s23 }
  0x12   :  { %p389_p8 = por %p388_p7, %p387_p6 }
  0x14   :  { %p390_p9 = pnand %p389_p8, %p383_p5 }
  0x16   :  { %393 = shalt.err (!%p390_p9)
}
  0x17   :  { %33 = dma.hbm_to_vmem [thread:$0]  %s540_s2, 16, %s31_s18, [#allocation6]  }
  0x18   :  { %414 = dma.done.wait [#allocation3], 16  }
  0x19   :  { %415 = vsyncadd [#allocation3], 4294967280 }
  0x1a   :  { %416 = dma.done.wait [#allocation6], 16  }
  0x1b   :  { %417 = vsyncadd [#allocation6], 4294967280  ;;  %v42_v0 = vld [vmem:[#allocation2] sm:$0x1]  ;;  %vm45_vm0 = vcmask 1040384   ;;  %v422_v4 = vmov 0   ;;  %v95_v33 = vlaneseq }
  0x1c   :  { %v43_v1 = vld [vmem:[%s539_s1] sm:$0x1]  ;;  %350 = vset.pattern.permute.xlu1 %v422_v4  ;;  %v56_v12 = vld [vmem:[#allocation5] sm:$0x1] }
  0x1d   :  { %v44_v2 = vmul.f32 %v43_v1, %v42_v0  ;;  %352 = vrcp.f32 %v56_v12  ;;  %v96_v34 = vshrl.u32 %v95_v33, 7  ;;  %v93_v39 = vld [vmem:[%s541_s3] sm:$0xf]  ;;  %s423_s3 = smov [#allocation7]  }
  0x1e   :  { %s328_s29 = sshll.u32 %s423_s3, 4  ;;  %s329_s29 = int_to_ptr.vmem [resolvable:$true] %s328_s29 }
  0x1f   :  { %v46_v3 = vsel %vm45_vm0, %v44_v2, 0.0  ;;  %v97_v35 = vsub.s32 0, %v96_v34  ;;  %v101_v36 = vsub.s32 1, %v96_v34  ;;  %v105_v37 = vsub.s32 2, %v96_v34  ;;  %s394_s30 = scalar_lea.vmem %s329_s29, 8192  ;;  %p399_p11 = scmp.lt.s32.totalorder %s329_s29, %s329_s29 }
  0x20   :  { %47 = vadd.xlane.f32.xlu0 %v46_v3  ;;  %v109_v38 = vsub.s32 3, %v96_v34  ;;  %p395_p10 = scmp.ne.s32.totalorder %s329_s29, %s394_s30  ;;  %p400_p12 = scmp.lt.s32.totalorder %s394_s30, %s394_s30 }
  0x21   :  { %v463_v40 = vrot.slane %v93_v39, %v97_v35  ;;  %v465_v41 = vrot.slane %v93_v39, %v101_v36  ;;  %v467_v42 = vrot.slane %v93_v39, %v105_v37 }
  0x22   :  { %v469_v43 = vrot.slane %v93_v39, %v109_v38  ;;  %p401_p13 = por %p400_p12, %p399_p11 }
  0x24   :  { %p402_p0 = pnand %p401_p13, %p395_p10 }
  0x2a   :  { %v353_v13 = vpop.eup %352 }
  0xa9   :  { %v48_v5 = vpop.xlane.xlu0 %47 }
  0xaa   :  { %v49_v6 = vrot.slane %v48_v5, 4 }
  0xac   :  { %v50_v7 = vadd.f32 %v49_v6, %v48_v5 }
  0xae   :  { %v51_v8 = vrot.slane %v50_v7, 2 }
  0xb0   :  { %v52_v9 = vadd.f32 %v51_v8, %v50_v7 }
  0xb2   :  { %v53_v10 = vrot.slane %v52_v9, 1 }
  0xb4   :  { %v54_v11 = vadd.f32 %v53_v10, %v52_v9 }
  0xb6   :  { %341 = vpush %v54_v11 }
  0xe7   :  { %s342_s0 = spop %341 }
  0xe8   :  { %v58_v14 = vstv %s342_s0 }
  0xe9   :  { %v59_v15 = vmul.f32 %v353_v13, %v58_v14 }
  0xeb   :  { %v60_v16 = vsub.f32 %v59_v15, %v59_v15 }
  0xed   :  { %61 = vxpose.xlu0.b32.start.end [1/1] (short) %v60_v16, 128 }
 0x116   :  { %351 = vset.pattern.permute.xlu0 %v422_v4 }
 0x169   :  { %v77_v17 = vpop.trf.xlu0 }
 0x16a   :  { %117 = vperm.xlu1 %350, %v77_v17  }
 0x16d   :  { %v78_v18 = vpop.trf.xlu0 }
 0x16e   :  { %122 = vperm.xlu1 %350, %v78_v18  }
 0x171   :  { %v79_v19 = vpop.trf.xlu0 }
 0x172   :  { %127 = vperm.xlu1 %350, %v79_v19  }
 0x175   :  { %v80_v20 = vpop.trf.xlu0 }
 0x176   :  { %132 = vperm.xlu1 %350, %v80_v20  }
 0x179   :  { %v81_v21 = vpop.trf.xlu0 }
 0x17a   :  { %137 = vperm.xlu1 %350, %v81_v21  }
 0x17d   :  { %v82_v22 = vpop.trf.xlu0 }
 0x17e   :  { %142 = vperm.xlu1 %350, %v82_v22  }
 0x181   :  { %v83_v23 = vpop.trf.xlu0 }
 0x182   :  { %147 = vperm.xlu1 %350, %v83_v23  }
 0x185   :  { %v84_v24 = vpop.trf.xlu0 }
 0x186   :  { %152 = vperm.xlu1 %350, %v84_v24  }
 0x189   :  { %v85_v25 = vpop.trf.xlu0 }
 0x18a   :  { %157 = vperm.xlu1 %350, %v85_v25  }
 0x18d   :  { %v86_v26 = vpop.trf.xlu0 }
 0x18e   :  { %162 = vperm.xlu1 %350, %v86_v26  }
 0x191   :  { %v87_v27 = vpop.trf.xlu0 }
 0x192   :  { %167 = vperm.xlu1 %350, %v87_v27  }
 0x195   :  { %v88_v28 = vpop.trf.xlu0 }
 0x196   :  { %172 = vperm.xlu1 %350, %v88_v28  }
 0x199   :  { %v89_v29 = vpop.trf.xlu0 }
 0x19a   :  { %177 = vperm.xlu1 %350, %v89_v29  }
 0x19d   :  { %v90_v30 = vpop.trf.xlu0 }
 0x19e   :  { %182 = vperm.xlu0 %351, %v90_v30  }
 0x1a1   :  { %v91_v31 = vpop.trf.xlu0 }
 0x1a2   :  { %187 = vperm.xlu1 %350, %v91_v31  }
 0x1a5   :  { %v92_v32 = vpop.trf.xlu0 }
 0x1a6   :  { %192 = vperm.xlu1 %350, %v92_v32  }
 0x1e5   :  { %v118_v44 = vpop.permute.xlu1 %117 }
 0x1e6   :  { %v195_v45 = vadd.f32 %v118_v44, %v463_v40  ;;  %v196_v46 = vadd.f32 %v118_v44, %v465_v41  ;;  %v197_v47 = vadd.f32 %v118_v44, %v467_v42  ;;  %v198_v48 = vadd.f32 %v118_v44, %v469_v43 }
 0x1e8   :  { %259 = vst [vmem:[#allocation7] sm:$0xff] %v195_v45  ;;  %260 = vst [vmem:[#allocation7 + $0x8] sm:$0xff] %v196_v46 }
 0x1e9   :  { %261 = vst [vmem:[#allocation7 + $0x10] sm:$0xff] %v197_v47  ;;  %262 = vst [vmem:[#allocation7 + $0x18] sm:$0xff] %v198_v48  ;;  %v123_v49 = vpop.permute.xlu1 %122 }
 0x1ea   :  { %v199_v50 = vadd.f32 %v123_v49, %v463_v40  ;;  %v200_v51 = vadd.f32 %v123_v49, %v465_v41  ;;  %v201_v52 = vadd.f32 %v123_v49, %v467_v42  ;;  %v202_v53 = vadd.f32 %v123_v49, %v469_v43 }
 0x1ec   :  { %263 = vst [vmem:[#allocation7 + $0x20] sm:$0xff] %v199_v50  ;;  %264 = vst [vmem:[#allocation7 + $0x28] sm:$0xff] %v200_v51 }
 0x1ed   :  { %265 = vst [vmem:[#allocation7 + $0x30] sm:$0xff] %v201_v52  ;;  %266 = vst [vmem:[#allocation7 + $0x38] sm:$0xff] %v202_v53  ;;  %v128_v54 = vpop.permute.xlu1 %127 }
 0x1ee   :  { %v203_v55 = vadd.f32 %v128_v54, %v463_v40  ;;  %v204_v56 = vadd.f32 %v128_v54, %v465_v41  ;;  %v205_v57 = vadd.f32 %v128_v54, %v467_v42  ;;  %v206_v58 = vadd.f32 %v128_v54, %v469_v43 }
 0x1f0   :  { %267 = vst [vmem:[#allocation7 + $0x40] sm:$0xff] %v203_v55  ;;  %268 = vst [vmem:[#allocation7 + $0x48] sm:$0xff] %v204_v56 }
 0x1f1   :  { %269 = vst [vmem:[#allocation7 + $0x50] sm:$0xff] %v205_v57  ;;  %270 = vst [vmem:[#allocation7 + $0x58] sm:$0xff] %v206_v58  ;;  %v133_v59 = vpop.permute.xlu1 %132 }
 0x1f2   :  { %v207_v60 = vadd.f32 %v133_v59, %v463_v40  ;;  %v208_v61 = vadd.f32 %v133_v59, %v465_v41  ;;  %v209_v62 = vadd.f32 %v133_v59, %v467_v42  ;;  %v210_v63 = vadd.f32 %v133_v59, %v469_v43 }
 0x1f4   :  { %271 = vst [vmem:[#allocation7 + $0x60] sm:$0xff] %v207_v60  ;;  %272 = vst [vmem:[#allocation7 + $0x68] sm:$0xff] %v208_v61 }
 0x1f5   :  { %273 = vst [vmem:[#allocation7 + $0x70] sm:$0xff] %v209_v62  ;;  %274 = vst [vmem:[#allocation7 + $0x78] sm:$0xff] %v210_v63  ;;  %v138_v0 = vpop.permute.xlu1 %137 }
 0x1f6   :  { %v211_v1 = vadd.f32 %v138_v0, %v463_v40  ;;  %v212_v2 = vadd.f32 %v138_v0, %v465_v41  ;;  %v213_v3 = vadd.f32 %v138_v0, %v467_v42  ;;  %v214_v4 = vadd.f32 %v138_v0, %v469_v43 }
 0x1f8   :  { %275 = vst [vmem:[#allocation7 + $0x80] sm:$0xff] %v211_v1  ;;  %276 = vst [vmem:[#allocation7 + $0x88] sm:$0xff] %v212_v2 }
 0x1f9   :  { %277 = vst [vmem:[#allocation7 + $0x90] sm:$0xff] %v213_v3  ;;  %278 = vst [vmem:[#allocation7 + $0x98] sm:$0xff] %v214_v4  ;;  %v143_v5 = vpop.permute.xlu1 %142 }
 0x1fa   :  { %v215_v6 = vadd.f32 %v143_v5, %v463_v40  ;;  %v216_v7 = vadd.f32 %v143_v5, %v465_v41  ;;  %v217_v8 = vadd.f32 %v143_v5, %v467_v42  ;;  %v218_v9 = vadd.f32 %v143_v5, %v469_v43 }
 0x1fc   :  { %279 = vst [vmem:[#allocation7 + $0xa0] sm:$0xff] %v215_v6  ;;  %280 = vst [vmem:[#allocation7 + $0xa8] sm:$0xff] %v216_v7 }
 0x1fd   :  { %281 = vst [vmem:[#allocation7 + $0xb0] sm:$0xff] %v217_v8  ;;  %282 = vst [vmem:[#allocation7 + $0xb8] sm:$0xff] %v218_v9  ;;  %v148_v10 = vpop.permute.xlu1 %147 }
 0x1fe   :  { %v219_v11 = vadd.f32 %v148_v10, %v463_v40  ;;  %v220_v12 = vadd.f32 %v148_v10, %v465_v41  ;;  %v221_v13 = vadd.f32 %v148_v10, %v467_v42  ;;  %v222_v14 = vadd.f32 %v148_v10, %v469_v43 }
 0x200   :  { %283 = vst [vmem:[#allocation7 + $0xc0] sm:$0xff] %v219_v11  ;;  %284 = vst [vmem:[#allocation7 + $0xc8] sm:$0xff] %v220_v12 }
 0x201   :  { %285 = vst [vmem:[#allocation7 + $0xd0] sm:$0xff] %v221_v13  ;;  %286 = vst [vmem:[#allocation7 + $0xd8] sm:$0xff] %v222_v14  ;;  %v153_v15 = vpop.permute.xlu1 %152 }
 0x202   :  { %v223_v16 = vadd.f32 %v153_v15, %v463_v40  ;;  %v224_v17 = vadd.f32 %v153_v15, %v465_v41  ;;  %v225_v18 = vadd.f32 %v153_v15, %v467_v42  ;;  %v226_v19 = vadd.f32 %v153_v15, %v469_v43 }
 0x204   :  { %287 = vst [vmem:[#allocation7 + $0xe0] sm:$0xff] %v223_v16  ;;  %288 = vst [vmem:[#allocation7 + $0xe8] sm:$0xff] %v224_v17 }
 0x205   :  { %289 = vst [vmem:[#allocation7 + $0xf0] sm:$0xff] %v225_v18  ;;  %290 = vst [vmem:[#allocation7 + $0xf8] sm:$0xff] %v226_v19  ;;  %v158_v20 = vpop.permute.xlu1 %157 }
 0x206   :  { %v227_v21 = vadd.f32 %v158_v20, %v463_v40  ;;  %v228_v22 = vadd.f32 %v158_v20, %v465_v41  ;;  %v229_v23 = vadd.f32 %v158_v20, %v467_v42  ;;  %v230_v24 = vadd.f32 %v158_v20, %v469_v43 }
 0x208   :  { %291 = vst [vmem:[#allocation7 + $0x100] sm:$0xff] %v227_v21  ;;  %292 = vst [vmem:[#allocation7 + $0x108] sm:$0xff] %v228_v22 }
 0x209   :  { %293 = vst [vmem:[#allocation7 + $0x110] sm:$0xff] %v229_v23  ;;  %294 = vst [vmem:[#allocation7 + $0x118] sm:$0xff] %v230_v24  ;;  %v163_v25 = vpop.permute.xlu1 %162 }
 0x20a   :  { %v231_v26 = vadd.f32 %v163_v25, %v463_v40  ;;  %v232_v27 = vadd.f32 %v163_v25, %v465_v41  ;;  %v233_v28 = vadd.f32 %v163_v25, %v467_v42  ;;  %v234_v29 = vadd.f32 %v163_v25, %v469_v43 }
 0x20c   :  { %295 = vst [vmem:[#allocation7 + $0x120] sm:$0xff] %v231_v26  ;;  %296 = vst [vmem:[#allocation7 + $0x128] sm:$0xff] %v232_v27 }
 0x20d   :  { %297 = vst [vmem:[#allocation7 + $0x130] sm:$0xff] %v233_v28  ;;  %298 = vst [vmem:[#allocation7 + $0x138] sm:$0xff] %v234_v29  ;;  %v168_v30 = vpop.permute.xlu1 %167 }
 0x20e   :  { %v235_v31 = vadd.f32 %v168_v30, %v463_v40  ;;  %v236_v32 = vadd.f32 %v168_v30, %v465_v41  ;;  %v237_v33 = vadd.f32 %v168_v30, %v467_v42  ;;  %v238_v34 = vadd.f32 %v168_v30, %v469_v43 }
 0x210   :  { %299 = vst [vmem:[#allocation7 + $0x140] sm:$0xff] %v235_v31  ;;  %300 = vst [vmem:[#allocation7 + $0x148] sm:$0xff] %v236_v32 }
 0x211   :  { %301 = vst [vmem:[#allocation7 + $0x150] sm:$0xff] %v237_v33  ;;  %302 = vst [vmem:[#allocation7 + $0x158] sm:$0xff] %v238_v34  ;;  %v173_v35 = vpop.permute.xlu1 %172 }
 0x212   :  { %v239_v36 = vadd.f32 %v173_v35, %v463_v40  ;;  %v240_v37 = vadd.f32 %v173_v35, %v465_v41  ;;  %v241_v38 = vadd.f32 %v173_v35, %v467_v42  ;;  %v242_v39 = vadd.f32 %v173_v35, %v469_v43 }
 0x214   :  { %303 = vst [vmem:[#allocation7 + $0x160] sm:$0xff] %v239_v36  ;;  %304 = vst [vmem:[#allocation7 + $0x168] sm:$0xff] %v240_v37 }
 0x215   :  { %305 = vst [vmem:[#allocation7 + $0x170] sm:$0xff] %v241_v38  ;;  %306 = vst [vmem:[#allocation7 + $0x178] sm:$0xff] %v242_v39  ;;  %v178_v44 = vpop.permute.xlu1 %177 }
 0x216   :  { %v243_v45 = vadd.f32 %v178_v44, %v463_v40  ;;  %v244_v46 = vadd.f32 %v178_v44, %v465_v41  ;;  %v245_v47 = vadd.f32 %v178_v44, %v467_v42  ;;  %v246_v48 = vadd.f32 %v178_v44, %v469_v43 }
 0x218   :  { %307 = vst [vmem:[#allocation7 + $0x180] sm:$0xff] %v243_v45  ;;  %308 = vst [vmem:[#allocation7 + $0x188] sm:$0xff] %v244_v46 }
 0x219   :  { %309 = vst [vmem:[#allocation7 + $0x190] sm:$0xff] %v245_v47  ;;  %310 = vst [vmem:[#allocation7 + $0x198] sm:$0xff] %v246_v48  ;;  %v183_v49 = vpop.permute.xlu0 %182 }
 0x21a   :  { %v247_v50 = vadd.f32 %v183_v49, %v463_v40  ;;  %v248_v51 = vadd.f32 %v183_v49, %v465_v41  ;;  %v249_v52 = vadd.f32 %v183_v49, %v467_v42  ;;  %v250_v53 = vadd.f32 %v183_v49, %v469_v43 }
 0x21c   :  { %311 = vst [vmem:[#allocation7 + $0x1a0] sm:$0xff] %v247_v50  ;;  %312 = vst [vmem:[#allocation7 + $0x1a8] sm:$0xff] %v248_v51 }
 0x21d   :  { %313 = vst [vmem:[#allocation7 + $0x1b0] sm:$0xff] %v249_v52  ;;  %314 = vst [vmem:[#allocation7 + $0x1b8] sm:$0xff] %v250_v53  ;;  %v188_v54 = vpop.permute.xlu1 %187 }
 0x21e   :  { %v251_v55 = vadd.f32 %v188_v54, %v463_v40  ;;  %v252_v56 = vadd.f32 %v188_v54, %v465_v41  ;;  %v253_v57 = vadd.f32 %v188_v54, %v467_v42  ;;  %v254_v58 = vadd.f32 %v188_v54, %v469_v43 }
 0x220   :  { %315 = vst [vmem:[#allocation7 + $0x1c0] sm:$0xff] %v251_v55  ;;  %316 = vst [vmem:[#allocation7 + $0x1c8] sm:$0xff] %v252_v56 }
 0x221   :  { %317 = vst [vmem:[#allocation7 + $0x1d0] sm:$0xff] %v253_v57  ;;  %318 = vst [vmem:[#allocation7 + $0x1d8] sm:$0xff] %v254_v58  ;;  %v193_v59 = vpop.permute.xlu1 %192 }
 0x222   :  { %v255_v60 = vadd.f32 %v193_v59, %v463_v40  ;;  %v256_v61 = vadd.f32 %v193_v59, %v465_v41  ;;  %v257_v62 = vadd.f32 %v193_v59, %v467_v42  ;;  %v258_v63 = vadd.f32 %v193_v59, %v469_v43 }
 0x224   :  { %319 = vst [vmem:[#allocation7 + $0x1e0] sm:$0xff] %v255_v60  ;;  %320 = vst [vmem:[#allocation7 + $0x1e8] sm:$0xff] %v256_v61 }
 0x225   :  { %321 = vst [vmem:[#allocation7 + $0x1f0] sm:$0xff] %v257_v62  ;;  %322 = vst [vmem:[#allocation7 + $0x1f8] sm:$0xff] %v258_v63 }
 0x226   :  { %405 = shalt.err (!%p402_p0)
}
 0x227   :  { %s424_s5 = smov 512   ;;  %s425_s6 = smov 32  }
 0x228   :  { %334 = dma.vmem_to_hbm [thread:$0]  %s329_s29, 8192, %s542_s4, [#allocation4], %s424_s5, %s424_s5, %s425_s6  }
 0x229   :  { %418 = dma.done.wait [#allocation4], 8192  }
 0x22a   :  { %419 = vsyncadd [#allocation4], 4294959104 }
 0x22b   :  { %338 = vsyncpa [#allocation3], 1 }
 0x22c   :  { %339 = vsyncpa [#allocation6], 1 }
 0x22d   :  { %340 = vsyncpa [#allocation4], 1 }

</bundles_post_ra>
